<compile_context>
chip_gen: v5e
topology: v5e:2x2
jax: 0.10.0
libtpu: 0.0.40
codegen_flags: <defaults>
</compile_context>

<pallas_src>
import functools

import jax
import jax.numpy as jnp
from jax.experimental import pallas as pl
from jax.experimental.pallas import tpu as pltpu

LANES = 128
SUBLANES = 8


def _round_up(x, m):
    return (x + m - 1) // m * m


def _focal_loss_kernel(x_ref, t_ref, o_ref, *, gamma, n_total, block_rows,
                       needs_mask, binary_targets):
    x = x_ref[...].astype(jnp.float32)
    t = t_ref[...].astype(jnp.float32)

    # Numerically stable binary_cross_entropy_with_logits (reduce=False):
    #   bce = max(x, 0) - x*t + log1p(exp(-|x|))
    e = jnp.exp(-jnp.abs(x))
    bce = jnp.maximum(x, 0.0) - x * t + jnp.log1p(e)

    if binary_targets:
        # For t in {0, 1}:  pt = p^t (1-p)^(1-t) with p = sigmoid(x), so
        #   1 - pt = (1-p) if t == 1 else p
        #          = where((t - 0.5) * x >= 0, e, 1) / (1 + e)
        # This removes the third transcendental (exp(-bce)).  approx=False
        # keeps near-parity with the exp(-bce) reference; approx=True (EUP
        # vrcp, nearly free) is available if the tolerance budget allows.
        inv = pl.reciprocal(1.0 + e, approx=False)
        w = jnp.where((t - 0.5) * x >= 0.0, e, 1.0) * inv
    else:
        # Soft (non-binary) targets: exact module semantics.
        w = 1.0 - jnp.exp(-bce)

    # Focal modulation (1 - pt) ** gamma.  Small integer gamma (default 2)
    # -> repeated VPU multiplies, no exp/log EUP traffic, no NaN risk.
    g = float(gamma)
    if g == 0.0:
        mod = jnp.ones_like(w)
    elif g.is_integer() and 0.0 < g <= 8.0:
        mod = w
        for _ in range(int(g) - 1):
            mod = mod * w
    else:
        mod = jnp.maximum(w, 0.0) ** g  # clamp so rounding can't NaN the pow

    focal = mod * bce  # alpha applied once to the final scalar in the wrapper

    if needs_mask:
        # Ragged tail: zero every element whose flat index >= n_total.  Covers
        # both the <128-element pad of the last row and the undefined rows of
        # a partial last block (no host-side pad-to-block-multiple copy).
        row = jax.lax.broadcasted_iota(jnp.int32, focal.shape, 0)
        lane = jax.lax.broadcasted_iota(jnp.int32, focal.shape, 1)
        flat_idx = (pl.program_id(0) * block_rows + row) * LANES + lane
        focal = jnp.where(flat_idx < n_total, focal, 0.0)

    # Per-block lane-dense (8, 128) partial: pure VPU adds, no cross-lane XLU
    # work per grid step (final collapse happens once in the wrapper).
    groups = block_rows // SUBLANES
    if groups % 8 == 0 and groups >= 16:
        # Two-stage fold: 8 independent accumulation chains keep the VPU
        # pipelined (and bound f32 rounding error) instead of a single
        # (groups-1)-deep serial add chain.
        f4 = focal.reshape(8, groups // 8, SUBLANES, LANES)
        partial = jnp.sum(jnp.sum(f4, axis=1), axis=0)
    else:
        partial = jnp.sum(focal.reshape(groups, SUBLANES, LANES), axis=0)
    o_ref[0] = partial


def focal_loss(inputs, targets, alpha=1.0, gamma=2.0, block_rows=2048,
               binary_targets=True):
    """Mean focal loss over all elements (matches PyTorch FocalLoss.forward).

    `targets` may be f32 / bf16 / int8 / bool; the kernel upcasts in VMEM, so
    narrow target dtypes shrink the second HBM stream.  Set
    binary_targets=False if targets are soft (not exactly 0/1).
    """
    assert inputs.shape == targets.shape
    n_total = inputs.size

    x_flat = inputs.reshape(-1)
    t_flat = targets.reshape(-1)

    # Lane-dense [rows, 128] slab.  When n_total % 128 == 0 this is a pure
    # reshape (no HBM copy).  Otherwise pad by < 128 elements.
    # TODO(synk): the <128-element pad still goes through an XLA concatenate
    # (full stream copy); sizes divisible by 128 take the zero-copy path.
    rem = n_total % LANES
    if rem:
        pad = LANES - rem
        x_flat = jnp.concatenate([x_flat, jnp.zeros((pad,), x_flat.dtype)])
        t_flat = jnp.concatenate([t_flat, jnp.zeros((pad,), t_flat.dtype)])
    rows = x_flat.size // LANES
    x2 = x_flat.reshape(rows, LANES)
    t2 = t_flat.reshape(rows, LANES)

    # Tile selection: big blocks amortise the ~0.35 us/step overhead (2048 rows
    # = 1 MiB f32 per input per step; 4 MiB double-buffered VMEM, safe under
    # v5e's 16 MiB default scoped limit), but keep at least two grid steps so
    # the "parallel" grid axis can be sharded across both v7x TensorCores.
    block_rows = _round_up(
        max(SUBLANES, min(int(block_rows), _round_up(rows, SUBLANES))),
        SUBLANES)
    if rows > SUBLANES and pl.cdiv(rows, block_rows) < 2:
        block_rows = _round_up(pl.cdiv(rows, 2), SUBLANES)
    grid_n = pl.cdiv(rows, block_rows)

    needs_mask = (rows * LANES != n_total) or (rows % block_rows != 0)

    kernel = functools.partial(
        _focal_loss_kernel, gamma=float(gamma), n_total=n_total,
        block_rows=block_rows, needs_mask=needs_mask,
        binary_targets=binary_targets)

    out_bytes = grid_n * SUBLANES * LANES * 4
    cost = pl.CostEstimate(
        flops=14 * rows * LANES,
        transcendentals=2 * rows * LANES,
        bytes_accessed=int(x2.size * x2.dtype.itemsize
                           + t2.size * t2.dtype.itemsize + out_bytes),
    )

    partials = pl.pallas_call(
        kernel,
        out_shape=jax.ShapeDtypeStruct((grid_n, SUBLANES, LANES), jnp.float32),
        grid_spec=pltpu.PrefetchScalarGridSpec(
            num_scalar_prefetch=0,
            grid=(grid_n,),
            in_specs=[
                pl.BlockSpec((block_rows, LANES), lambda i: (i, 0)),
                pl.BlockSpec((block_rows, LANES), lambda i: (i, 0)),
            ],
            out_specs=pl.BlockSpec((1, SUBLANES, LANES), lambda i: (i, 0, 0)),
        ),
        compiler_params=pltpu.CompilerParams(
            dimension_semantics=("parallel",),  # independent partial sums
        ),
        cost_estimate=cost,
    )(x2, t2)

    # Single final lane/sublane collapse + mean; alpha applied once here.
    return alpha * (jnp.sum(partials) / n_total)


def focal_loss_ref(inputs, targets, alpha=1.0, gamma=2.0):
    x = inputs.astype(jnp.float32)
    t = targets.astype(jnp.float32)
    bce = jnp.maximum(x, 0.0) - x * t + jnp.log1p(jnp.exp(-jnp.abs(x)))
    pt = jnp.exp(-bce)
    return jnp.mean(alpha * (1.0 - pt) ** gamma * bce)


if __name__ == "__main__":
    key = jax.random.PRNGKey(0)
    k1, k2, k3, k4, k5, k6 = jax.random.split(key, 6)

    # 1) NCHW logits + f32 binary targets (module-faithful call).
    #    2048 elements -> rows=16, grid_n=2 (megacore-friendly), no mask path.
    x = jax.random.normal(k1, (2, 4, 16, 16), dtype=jnp.float32)
    tgt = (jax.random.uniform(k2, (2, 4, 16, 16)) > 0.5).astype(jnp.float32)
    loss = jax.block_until_ready(focal_loss(x, tgt, alpha=1.0, gamma=2.0))
    ref = focal_loss_ref(x, tgt, alpha=1.0, gamma=2.0)
    assert jnp.allclose(loss, ref, rtol=3e-5, atol=1e-6), (loss, ref)

    # 2) Odd shape (size not a multiple of 128) -> exercises the <128-element
    #    pad plus the in-kernel ragged-tail mask and a partial last block.
    x_odd = jax.random.normal(k3, (2, 3, 15, 17), dtype=jnp.float32)
    t_odd = (jax.random.uniform(k4, (2, 3, 15, 17)) > 0.5).astype(jnp.float32)
    loss_odd = jax.block_until_ready(focal_loss(x_odd, t_odd, alpha=0.25))
    ref_odd = focal_loss_ref(x_odd, t_odd, alpha=0.25)
    assert jnp.allclose(loss_odd, ref_odd, rtol=3e-5, atol=1e-6), (loss_odd, ref_odd)

    # 3) Medium size with int8 targets (narrow 2nd HBM stream) -> exercises the
    #    two-stage in-block fold (block_rows=128, grid_n=2).
    x_med = jax.random.normal(k5, (4, 8, 32, 32), dtype=jnp.float32)
    t_med = (jax.random.uniform(k6, (4, 8, 32, 32)) > 0.5).astype(jnp.int8)
    loss_med = jax.block_until_ready(focal_loss(x_med, t_med))
    ref_med = focal_loss_ref(x_med, t_med.astype(jnp.float32))
    assert jnp.allclose(loss_med, ref_med, rtol=3e-5, atol=1e-6), (loss_med, ref_med)

    print("KERNEL_OK")
</pallas_src>

<mosaic_0001>
module attributes {stable_mosaic.version = 11 : i64} {
  func.func @_focal_loss_kernel(%arg0: i32, %arg1: memref<8x128xf32, #tpu.memory_space<vmem>>, %arg2: memref<8x128xf32, #tpu.memory_space<vmem>>, %arg3: memref<1x8x128xf32, #tpu.memory_space<vmem>>) attributes {dimension_semantics = [#tpu.dimension_semantics<parallel>], iteration_bounds = array<i64: 2>, scalar_prefetch = 0 : i64, scratch_operands = 0 : i64, tpu.core_type = #tpu.core_type<tc>, window_params = [{transform_indices = @transform_0, window_bounds = array<i64: 8, 128>}, {transform_indices = @transform_1, window_bounds = array<i64: 8, 128>}, {transform_indices = @transform_2, window_bounds = array<i64: 1, 8, 128>}]} {
    %c0 = arith.constant 0 : index
    %c0_0 = arith.constant 0 : index
    %0 = vector.load %arg1[%c0, %c0_0] : memref<8x128xf32, #tpu.memory_space<vmem>>, vector<8x128xf32>
    %c0_1 = arith.constant 0 : index
    %c0_2 = arith.constant 0 : index
    %1 = vector.load %arg2[%c0_1, %c0_2] : memref<8x128xf32, #tpu.memory_space<vmem>>, vector<8x128xf32>
    %2 = math.absf %0 : vector<8x128xf32>
    %cst = arith.constant 0.000000e+00 : f32
    %3 = vector.broadcast %cst : f32 to vector<8x128xf32>
    %4 = arith.subf %3, %2 : vector<8x128xf32>
    %5 = math.exp %4 : vector<8x128xf32>
    %cst_3 = arith.constant 0.000000e+00 : f32
    %6 = vector.broadcast %cst_3 : f32 to vector<8x128xf32>
    %7 = arith.maximumf %0, %6 : vector<8x128xf32>
    %8 = arith.mulf %0, %1 : vector<8x128xf32>
    %9 = arith.subf %7, %8 : vector<8x128xf32>
    %10 = math.log1p %5 : vector<8x128xf32>
    %11 = arith.addf %9, %10 : vector<8x128xf32>
    %cst_4 = arith.constant 1.000000e+00 : f32
    %12 = vector.broadcast %cst_4 : f32 to vector<8x128xf32>
    %13 = arith.addf %12, %5 : vector<8x128xf32>
    %14 = tpu.reciprocal %13 : vector<8x128xf32> -> vector<8x128xf32>
    %cst_5 = arith.constant 5.000000e-01 : f32
    %15 = vector.broadcast %cst_5 : f32 to vector<8x128xf32>
    %16 = arith.subf %1, %15 : vector<8x128xf32>
    %17 = arith.mulf %16, %0 : vector<8x128xf32>
    %cst_6 = arith.constant 0.000000e+00 : f32
    %18 = vector.broadcast %cst_6 : f32 to vector<8x128xf32>
    %19 = arith.cmpf oge, %17, %18 : vector<8x128xf32>
    %cst_7 = arith.constant 1.000000e+00 : f32
    %20 = vector.broadcast %cst_7 : f32 to vector<8x128xf32>
    %21 = arith.select %19, %5, %20 : vector<8x128xi1>, vector<8x128xf32>
    %22 = arith.mulf %21, %14 : vector<8x128xf32>
    %23 = arith.mulf %22, %22 : vector<8x128xf32>
    %24 = arith.mulf %23, %11 : vector<8x128xf32>
    %25 = vector.shape_cast %24 : vector<8x128xf32> to vector<1x8x128xf32>
    %cst_8 = arith.constant dense<0.000000e+00> : vector<8x128xf32>
    %26 = vector.multi_reduction <add>, %25, %cst_8 [0] : vector<1x8x128xf32> to vector<8x128xf32>
    %c0_9 = arith.constant 0 : index
    %c0_10 = arith.constant 0 : index
    %c0_11 = arith.constant 0 : index
    %27 = vector.load %arg3[%c0_9, %c0_10, %c0_11] : memref<1x8x128xf32, #tpu.memory_space<vmem>>, vector<1x8x128xf32>
    %28 = vector.shape_cast %27 : vector<1x8x128xf32> to vector<8x128xf32>
    %29 = vector.shape_cast %26 : vector<8x128xf32> to vector<1x8x128xf32>
    tpu.vector_store %arg3[%c0_9, %c0_10, %c0_11], %29 {strides = array<i32>} : memref<1x8x128xf32, #tpu.memory_space<vmem>>, vector<1x8x128xf32>,
    return
  }
  func.func @transform_0(%arg0: i32) -> (i32, i32) {
    %c0_i32 = arith.constant 0 : i32
    %c0_i32_0 = arith.constant 0 : i32
    return %arg0, %c0_i32 : i32, i32
  }
  func.func @transform_1(%arg0: i32) -> (i32, i32) {
    %c0_i32 = arith.constant 0 : i32
    %c0_i32_0 = arith.constant 0 : i32
    return %arg0, %c0_i32 : i32, i32
  }
  func.func @transform_2(%arg0: i32) -> (i32, i32, i32) {
    %c0_i32 = arith.constant 0 : i32
    %c0_i32_0 = arith.constant 0 : i32
    %c0_i32_1 = arith.constant 0 : i32
    return %arg0, %c0_i32, %c0_i32_0 : i32, i32, i32
  }
}

</mosaic_0001>

<bundles_post_ra>
// kernel: tpu_custom_call.1
= control target key start
LH: loop header
LB: loop body
LE: loop exit
PB: predicated region body
PF: predicated region fallthrough
CT: control target
= control target key end

     0   :  { %7 = vsyncpa [#allocation3], 0  ;;  %s737_s0 = inlined_call_operand.hbm [shape: f32[16,128], index: 0, kind: input, shape index: {}]   ;;  %s738_s1 = inlined_call_operand.hbm [shape: f32[16,128], index: 1, kind: input, shape index: {}]   ;;  %s739_s2 = inlined_call_operand.hbm [shape: f32[2,8,128], index: 2, kind: output, shape index: {}]  }
   0x1   :  { %9 = vsyncpa [#allocation3 + $0x1], 0 }
   0x2   :  { %10 = vsyncpa [#allocation6], 0 }
   0x3   :  { %12 = vsyncpa [#allocation6 + $0x1], 0 }
   0x4   :  { %13 = vsyncpa [#allocation4], 0 }
   0x5   :  { %15 = vsyncpa [#allocation4 + $0x1], 0  ;;  %s572_s9 = smov 0   ;;  %s574_s10 = smov 0  }
   0x6   :  { %s576_s11 = smov 0   ;;  %s578_s12 = smov 0  }
   0x7 LB: > { %s593_s13 = sadd.s32 4294967295, %s555_s12   ;;  %s352_s14 = sadd.s32 4294967294, %s555_s12   ;;  %s555_s12 = sphi %s578_s12, %s750_s12   ;;  %s551_s11 = sphi %s576_s11, %s749_s11   ;;  %s547_s10 = sphi %s574_s10, %s748_s10   ;;  %s543_s9 = sphi %s572_s9, %s747_s9  }
   0x8   : > { %s597_s15 = sadd.s32 1, %s555_s12   ;;  %s28_s16 = sadd.s32 1, %s551_s11 }
   0x9   : > { %s25_s17 = ssub.s32 %s555_s12, %s597_s15  ;;  %p35_p0 = scmp.ne.s32.totalorder %s551_s11, %s547_s10 }
   0xa   : > { %p26_p1 = scmp.eq.s32.totalorder %s25_s17, 0  ;;  %p36_p2 = scmp.eq.s32.totalorder %s555_s12, 0 }
   0xb   : > { %p41_p3 = scmp.ne.s32.totalorder %s547_s10, %s543_s9  ;;  %p42_p4 = scmp.eq.s32.totalorder %s593_s13, 0 }
   0xc   : > { %s609_s18 = scalar_select %p26_p1, %s551_s11, %s28_s16  }
   0xd   : > { %p611_p5 = por %p36_p2, %p35_p0  ;;  %p615_p6 = por %p42_p4, %p41_p3 }
   0xe   : > { %p91_p7 = scmp.eq.s32.totalorder %s593_s13, 1  ;;  %p97_p8 = scmp.eq.s32.totalorder %s352_s14, 1 }
   0xf   : > { %p385_p10 = scmp.lt.s32.totalorder %s555_s12, 2  ;;  %s631_s23 = sand.u32 1, %s551_s11  }
  0x10   : > { %p622_p11 = por %p91_p7, %p35_p0  ;;  %p626_p12 = por %p97_p8, %p41_p3 }
  0x11   : > { %s356_s24 = sshll.u32 %s555_s12, 3  ;;  %s355_s25 = sshll.u32 %s631_s23, 3 }
  0x12   : > { %s125_s28 = scalar_lea.hbm %s737_s0, %s356_s24  ;;  %s121_s30 = scalar_lea.vmem [#allocation2], %s355_s25 }
  0x13   : > { %s127_s29 = sshll.u32 %s125_s28, 4  ;;  %s129_s3 = sshll.u32 %s121_s30, 4  ;;  %s128_s29 = int_to_ptr.hbm [resolvable:$true] %s127_s29  ;;  %s130_s3 = int_to_ptr.vmem [resolvable:$true] %s129_s3 }
  0x14   : > { %p640_p13 = pnand %p385_p10, %p611_p5  ;;  %p359_p0 = scmp.ge.s32.totalorder %s555_s12, 1 }
  0x15   : > { %p153_p1 = scmp.lt.s32.totalorder %s555_s12, 3  ;;  %s118_s5 = scalar_lea.sflag [#allocation3], %s631_s23 }
  0x16   : > { %s425_s6 = sshra.s32 %s128_s29, 4  ;;  %p429_p3 = pneg %p640_p13  ;;  %s426_s6 = int_to_ptr.hbm [resolvable:$true] %s425_s6 }
  0x17   : > { %s427_s7 = scalar_lea.hbm %s426_s6, 8  ;;  %s432_s16 = scalar_lea.hbm %s737_s0, 16 }
  0x18   : > { %p428_p2 = scmp.ne.s32.totalorder %s426_s6, %s427_s7  ;;  %p433_p5 = scmp.lt.s32.totalorder %s426_s6, %s737_s0 }
  0x19   : > { %p434_p8 = scmp.lt.s32.totalorder %s432_s16, %s427_s7 }
  0x1a   : > { %p430_p4 = pnand %p429_p3, %p428_p2 }
  0x1b   : > { %p435_p10 = por %p434_p8, %p433_p5 }
  0x1c   : > { %p431_p7 = pneg %p430_p4 }
  0x1e   : > { %p436_p9 = pnand %p435_p10, %p431_p7 }
  0x20   : > { %439 = shalt.err (!%p436_p9)
}
  0x21   : > { %377 = dma.hbm_to_vmem [thread:$0]  (!%p640_p13), %s128_s29, 128, %s130_s3, %s118_s5  }
  0x22   : > { %p664_p2 = pnand %p359_p0, %p153_p1  ;;  %s144_s30 = scalar_lea.hbm %s738_s1, %s356_s24 }
  0x23   : > { %s146_s6 = sshll.u32 %s144_s30, 4  ;;  %s140_s7 = scalar_lea.vmem [#allocation5], %s355_s25  ;;  %s147_s6 = int_to_ptr.hbm [resolvable:$true] %s146_s6 }
  0x24   : > { %s148_s8 = sshll.u32 %s140_s7, 4  ;;  %s137_s14 = scalar_lea.sflag [#allocation6], %s631_s23  ;;  %s149_s8 = int_to_ptr.vmem [resolvable:$true] %s148_s8 }
  0x25   : > { %s455_s16 = sshra.s32 %s147_s6, 4  ;;  %s462_s5 = scalar_lea.hbm %s738_s1, 16  ;;  %s456_s16 = int_to_ptr.hbm [resolvable:$true] %s455_s16 }
  0x26   : > { %s457_s17 = scalar_lea.hbm %s456_s16, 8  ;;  %p463_p4 = scmp.lt.s32.totalorder %s456_s16, %s738_s1 }
  0x27   : > { %p458_p9 = scmp.ne.s32.totalorder %s456_s16, %s457_s17  ;;  %p464_p7 = scmp.lt.s32.totalorder %s462_s5, %s457_s17 }
  0x29   : > { %p460_p0 = pnand %p458_p9, %p429_p3  ;;  %p465_p5 = por %p464_p7, %p463_p4 }
  0x2b   : > { %p461_p1 = pneg %p460_p0 }
  0x2d   : > { %p466_p8 = pnand %p465_p5, %p461_p1 }
  0x2f   : > { %469 = shalt.err (!%p466_p8)
}
  0x30   : > { %380 = dma.hbm_to_vmem [thread:$0]  (!%p640_p13), %s147_s6, 128, %s149_s8, %s137_s14  }
  0x31   : > { %157 = sbr.rel (%p664_p2) target bundleno = 99 (0x63), region = 28  ;;  %s686_s23 = sand.u32 (!%p664_p2), 1, %s547_s10  }
  0x32   : > { %s689_s25 = sshll.u32 (!%p664_p2), %s686_s23, 3  ;;  %s160_s27 = scalar_lea.sflag (!%p664_p2), [#allocation3], %s686_s23 }
  0x33   : > { %s163_s28 = scalar_lea.vmem (!%p664_p2), [#allocation2], %s689_s25 }
  0x36   : > { %530 = dma.done.wait (%p615_p6), %s160_s27, 128  }
  0x37   : > { %532 = vsyncadd (%p615_p6), %s160_s27, 4294967168  ;;  %s170_s4 = scalar_lea.sflag [#allocation6], %s686_s23  ;;  %s173_s26 = scalar_lea.vmem [#allocation5], %s689_s25 }
  0x38   : > { %534 = dma.done.wait (%p615_p6), %s170_s4, 128  }
  0x39   : > { %536 = vsyncadd (%p615_p6), %s170_s4, 4294967168  ;;  %v200_v0 = vld [vmem:[%s163_s28] sm:$0xff]  ;;  %v201_v6 = vld [vmem:[%s173_s26] sm:$0xff]  ;;  %s365_s20 = sshll.u32 %s593_s13, 3  ;;  %s199_s8 = scalar_lea.vmem [#allocation7], %s689_s25 }
  0x3a   : > { %v202_v1 = vand.u32 2147483647, %v200_v0  ;;  %v363_v8 = vadd.f32 -0.5, %v201_v6  ;;  %v206_v15 = vmax.f32 %v200_v0, 0.0  ;;  %v207_v16 = vmul.f32 %v201_v6, %v200_v0  ;;  %s254_s7 = scalar_lea.hbm %s739_s2, %s365_s20  ;;  %s256_s14 = sshll.u32 %s199_s8, 4  ;;  %s257_s14 = int_to_ptr.vmem [resolvable:$true] %s256_s14 }
  0x3b   : > { %s258_s16 = sshll.u32 %s254_s7, 4  ;;  %s244_s13 = scalar_lea.sflag [#allocation4], %s686_s23  ;;  %s259_s16 = int_to_ptr.hbm [resolvable:$true] %s258_s16 }
  0x3c   : > { %v203_v2 = vsub.f32 0.0, %v202_v1  ;;  %v235_v14 = vmul.f32 %v363_v8, %v200_v0  ;;  %v208_v24 = vsub.f32 %v206_v15, %v207_v16  ;;  %s499_s17 = sshra.s32 %s259_s16, 4  ;;  %s505_s19 = scalar_lea.hbm %s739_s2, 16  ;;  %s500_s17 = int_to_ptr.hbm [resolvable:$true] %s499_s17 }
  0x3d   : > { %s501_s29 = scalar_lea.hbm %s500_s17, 8  ;;  %p506_p10 = scmp.lt.s32.totalorder %s500_s17, %s739_s2 }
  0x3e   : > { %v204_v3 = vmul.f32 1.442695, %v203_v2  ;;  %vm236_vm3 = vcmp.ge.f32.partialorder %v235_v14, 0.0  ;;  %p502_p6 = scmp.ne.s32.totalorder %s500_s17, %s501_s29  ;;  %p507_p2 = scmp.lt.s32.totalorder %s505_s19, %s501_s29 }
  0x40   : > { %419 = vpow2.f32 %v204_v3  ;;  %p503_p13 = pnand %p502_p6, %p622_p11  ;;  %p508_p9 = por %p507_p2, %p506_p10 }
  0x42   : > { %p504_p3 = pneg %p503_p13 }
  0x44   : > { %p509_p0 = pnand %p508_p9, %p504_p3 }
  0x46   : > { %v420_v4 = vpop.eup %419 }
  0x47   : > { %v209_v5 = vadd.f32 1.0, %v420_v4  ;;  %v212_v7 = vmul.f32 -0.5, %v420_v4  ;;  %v215_v12 = vand.u32 2147483647, %v420_v4  ;;  %v237_v27 = vsel %vm236_vm3, %v420_v4, 1.0 }
  0x49   : > { %421 = vrcp.f32 %v209_v5  ;;  %v213_v10 = vadd.f32 1.0, %v212_v7  ;;  %v231_v17 = vand.u32 2147483648, %v209_v5  ;;  %vm225_vm0 = vweird.f32 %v209_v5 }
  0x4a   : > { %423 = vlog2.f32 %v209_v5  ;;  %v229_v19 = vand.u32 2147483647, %v209_v5  ;;  %vm216_vm2 = vcmp.lt.f32.partialorder %v215_v12, 0.0004427343 }
  0x4b   : > { %v214_v21 = vmul.f32 %v420_v4, %v213_v10  ;;  %v232_v23 = vor.u32 1.1754944e-38, %v231_v17 }
  0x4c   : > { %vm230_vm5 = vcmp.eq.f32.partialorder %v229_v19, 8.507059e+37 }
  0x4f   : > { %v422_v9 = vpop.eup %421 }
  0x50   : > { %v424_v11 = vpop.eup %423  ;;  %v221_v13 = vmul.f32 %v422_v9, %v209_v5  ;;  %vm226_vm1 = vweird.f32 %v422_v9 }
  0x51   : > { %v211_v20 = vmul.f32 0.6931472, %v424_v11  ;;  %vm227_vm4 = vmor %vm225_vm0, %vm226_vm1 }
  0x52   : > { %v222_v18 = vsub.f32 1.0, %v221_v13 }
  0x53   : > { %v217_v26 = vsel %vm216_vm2, %v214_v21, %v211_v20 }
  0x54   : > { %v223_v22 = vmul.f32 %v422_v9, %v222_v18  ;;  %v218_v30 = vadd.f32 %v217_v26, %v208_v24 }
  0x56   : > { %v224_v25 = vadd.f32 %v422_v9, %v223_v22 }
  0x58   : > { %v228_v28 = vsel %vm227_vm4, %v422_v9, %v224_v25 }
  0x59   : > { %v233_v29 = vsel %vm230_vm5, %v232_v23, %v228_v28 }
  0x5a   : > { %v238_v31 = vmul.f32 %v237_v27, %v233_v29 }
  0x5c   : > { %v239_v32 = vmul.f32 %v238_v31, %v238_v31 }
  0x5e   : > { %v240_v33 = vmul.f32 %v239_v32, %v218_v30 }
  0x60   : > { %242 = vst [vmem:[%s199_s8] sm:$0xff] %v240_v33 }
  0x61   : > { %512 = shalt.err (!%p509_p0)
}
  0x62   : > { %372 = dma.vmem_to_hbm [thread:$0]  (%p622_p11), %s257_s14, 128, %s259_s16, %s244_s13  }
  0x63 PF: > { %s270_s23 = sand.u32 1, %s543_s9   ;;  %p746_p1 = scmp.ge.s32.totalorder %s555_s12, 2 }
  0x64   : > { %s271_s27 = scalar_lea.sflag [#allocation4], %s270_s23 }
  0x65   : > { %p382_p4 = pnand %p746_p1, %p626_p12 }
  0x67   : > { %p383_p7 = pneg %p382_p4 }
  0x69   : > { %538 = dma.done.wait (%p383_p7), %s271_s27, 128  }
  0x6a   : > { %540 = vsyncadd (%p383_p7), %s271_s27, 4294967168  ;;  %p18_p5 = scmp.ge.s32.totalorder %s597_s15, 4   ;;  %s747_s9 = smov %s547_s10 }
  0x6b   : > { %s748_s10 = smov %s551_s11  ;;  %s749_s11 = smov %s609_s18 }
  0x6c   : > { %s750_s12 = smov %s597_s15  ;;  %20 = sbr.rel (!%p18_p5) target bundleno = 7 (0x7), region = 86 }
  0x71   :  { %277 = vsyncpa [#allocation3], 1 }
  0x72   :  { %279 = vsyncpa [#allocation3 + $0x1], 1 }
  0x73   :  { %280 = vsyncpa [#allocation6], 1 }
  0x74   :  { %282 = vsyncpa [#allocation6 + $0x1], 1 }
  0x75   :  { %283 = vsyncpa [#allocation4], 1 }
  0x76   :  { %285 = vsyncpa [#allocation4 + $0x1], 1 }

</bundles_post_ra>
